<compile_context>
chip_gen: v5e
topology: v5e:2x2
jax: 0.10.0
libtpu: 0.0.40
codegen_flags: <defaults>
</compile_context>

<pallas_src>
import numpy as np
import jax
import jax.numpy as jnp
from jax.experimental import pallas as pl


# ----------------------------------------------------------------------------- kernel
def _gcn_kernel(xt_ref, wbd_ref, w2t_ref, c_ref, o_ref):
    # xt_ref : (B*N, S)   node-major activations (state axis = lanes, 128-wide)
    # wbd_ref: (B*N, B*N) block-diagonal kron(I_B, W1 - I)  -> conv1 + residual
    # w2t_ref: (S, S)     W2^T                              -> conv2
    # c_ref  : (B*N, S)   b1 (x) rowsum(W2), tiled over batch (folded conv1 bias)
    # o_ref  : (B*N, S)   lane-dense output tile
    h = jnp.dot(wbd_ref[...], xt_ref[...], preferred_element_type=jnp.float32)
    o = jnp.dot(h, w2t_ref[...], preferred_element_type=jnp.float32) + c_ref[...]
    o_ref[...] = jnp.maximum(o, 0.0).astype(o_ref.dtype)


# ----------------------------------------------------------------------------- wrapper
def gcn_forward(x, w1, b1, w2):
    """Pallas GCN forward, same layout contract as the PyTorch module.

    x : (B, num_state, num_node)
    w1: (num_node, num_node)   -- conv1 weight (out_ch, in_ch), kernel dim squeezed
    b1: (num_node,)            -- conv1 bias
    w2: (num_state, num_state) -- conv2 weight (out_ch, in_ch), no bias
    returns (B, num_state, num_node)
    """
    B, S, N = x.shape
    x = x.astype(jnp.float32)
    w1 = jnp.asarray(w1, jnp.float32)
    b1 = jnp.asarray(b1, jnp.float32)
    w2 = jnp.asarray(w2, jnp.float32)

    # --- trace-time weight folding (tiny ops on weights only) ------------------
    # Residual subtract folded into conv1:  h2 = x @ (W1 - I)^T  (per (b,s) row).
    w1m = w1 - jnp.eye(N, dtype=jnp.float32)
    # Block-diagonal over batch so conv1 of the WHOLE batch is one 2D matmul in
    # the node-major layout: (B*N, B*N) @ (B*N, S).
    wbd = jnp.kron(jnp.eye(B, dtype=jnp.float32), w1m)
    # conv1 bias folded through conv2:  + b1[n] * sum_t W2[s, t]
    c = jnp.tile(jnp.outer(b1, jnp.sum(w2, axis=1)), (B, 1))          # (B*N, S)
    w2t = w2.T                                                        # (S, S)

    # --- layout plumbing: put the 128-long state axis on lanes ------------------
    # (For larger models the caller should keep the (B, N, S) layout end-to-end
    #  instead of transposing around the kernel.)
    xt2d = jnp.swapaxes(x, 1, 2).reshape(B * N, S)                    # (B*N, S)

    BN = B * N
    flops = 2 * BN * BN * S + 2 * BN * S * S
    bytes_accessed = 4 * (BN * S * 2 + BN * BN + S * S + BN * S)

    out2d = pl.pallas_call(
        _gcn_kernel,
        out_shape=jax.ShapeDtypeStruct((BN, S), jnp.float32),
        grid=(1,),  # single step: whole batch resident in VMEM, no per-batch overhead
        in_specs=[
            pl.BlockSpec((BN, S), lambda i: (0, 0)),    # activations (node-major)
            pl.BlockSpec((BN, BN), lambda i: (0, 0)),   # kron(I_B, W1 - I)
            pl.BlockSpec((S, S), lambda i: (0, 0)),     # W2^T
            pl.BlockSpec((BN, S), lambda i: (0, 0)),    # folded bias term
        ],
        out_specs=pl.BlockSpec((BN, S), lambda i: (0, 0)),
        cost_estimate=pl.CostEstimate(
            flops=flops, transcendentals=0, bytes_accessed=bytes_accessed
        ),
    )(xt2d, wbd, w2t, c)

    # back to the module's (B, num_state, num_node) layout
    return jnp.swapaxes(out2d.reshape(B, N, S), 1, 2)


# ----------------------------------------------------------------------------- reference
def gcn_reference(x, w1, b1, w2):
    hp = jax.lax.Precision.HIGHEST
    # h[b,s,n] = sum_m W1[n,m] x[b,s,m] + b1[n]
    h = jnp.einsum('bsm,nm->bsn', x, w1, precision=hp) + b1
    h = h - x
    # out[b,s,n] = relu( sum_t W2[s,t] h[b,t,n] )
    return jnp.maximum(jnp.einsum('st,btn->bsn', w2, h, precision=hp), 0.0)


# ----------------------------------------------------------------------------- main
if __name__ == "__main__":
    # FSP-Net uses GCN(num_state=dim_temp=128, num_node=mids*mids=16)
    B, NUM_STATE, NUM_NODE = 2, 128, 16

    key = jax.random.PRNGKey(0)
    kx, k1, kb, k2 = jax.random.split(key, 4)
    x = jax.random.normal(kx, (B, NUM_STATE, NUM_NODE), dtype=jnp.float32)
    w1 = jax.random.normal(k1, (NUM_NODE, NUM_NODE), dtype=jnp.float32) / np.sqrt(NUM_NODE)
    b1 = 0.1 * jax.random.normal(kb, (NUM_NODE,), dtype=jnp.float32)
    w2 = jax.random.normal(k2, (NUM_STATE, NUM_STATE), dtype=jnp.float32) / np.sqrt(NUM_STATE)

    out = jax.block_until_ready(jax.jit(gcn_forward)(x, w1, b1, w2))
    ref = jax.block_until_ready(jax.jit(gcn_reference)(x, w1, b1, w2))

    assert out.shape == (B, NUM_STATE, NUM_NODE), out.shape
    assert bool(jnp.all(jnp.isfinite(out)))
    max_err = float(jnp.max(jnp.abs(out - ref)))
    assert bool(jnp.allclose(out, ref, atol=1e-3, rtol=1e-3)), max_err
    print("KERNEL_OK")
</pallas_src>

<mosaic_0001>
module attributes {stable_mosaic.version = 11 : i64} {
  func.func @_gcn_kernel(%arg0: i32, %arg1: memref<32x128xf32, #tpu.memory_space<vmem>>, %arg2: memref<32x32xf32, #tpu.memory_space<vmem>>, %arg3: memref<128x128xf32, #tpu.memory_space<vmem>>, %arg4: memref<32x128xf32, #tpu.memory_space<vmem>>, %arg5: memref<32x128xf32, #tpu.memory_space<vmem>>) attributes {dimension_semantics = [#tpu.dimension_semantics<arbitrary>], iteration_bounds = array<i64: 1>, scalar_prefetch = 0 : i64, scratch_operands = 0 : i64, tpu.core_type = #tpu.core_type<tc>, window_params = [{pipeline_mode = #tpu.pipeline_mode<synchronous>, transform_indices = @transform_0, window_bounds = array<i64: 32, 128>}, {pipeline_mode = #tpu.pipeline_mode<synchronous>, transform_indices = @transform_1, window_bounds = array<i64: 32, 32>}, {pipeline_mode = #tpu.pipeline_mode<synchronous>, transform_indices = @transform_2, window_bounds = array<i64: 128, 128>}, {pipeline_mode = #tpu.pipeline_mode<synchronous>, transform_indices = @transform_3, window_bounds = array<i64: 32, 128>}, {pipeline_mode = #tpu.pipeline_mode<synchronous>, transform_indices = @transform_4, window_bounds = array<i64: 32, 128>}]} {
    %c0 = arith.constant 0 : index
    %c0_0 = arith.constant 0 : index
    %0 = vector.load %arg2[%c0, %c0_0] : memref<32x32xf32, #tpu.memory_space<vmem>>, vector<32x32xf32>
    %c0_1 = arith.constant 0 : index
    %c0_2 = arith.constant 0 : index
    %1 = vector.load %arg1[%c0_1, %c0_2] : memref<32x128xf32, #tpu.memory_space<vmem>>, vector<32x128xf32>
    %cst = arith.constant dense<0.000000e+00> : vector<32x128xf32>
    %2 = tpu.matmul %0, %1, %cst {dimension_numbers = #tpu.dot_dimension_numbers<[1], [0], [0], [1], [0, 0, 1, 1], [], []>} : vector<32x32xf32>, vector<32x128xf32>, vector<32x128xf32> -> vector<32x128xf32>
    %c0_3 = arith.constant 0 : index
    %c0_4 = arith.constant 0 : index
    %3 = vector.load %arg3[%c0_3, %c0_4] : memref<128x128xf32, #tpu.memory_space<vmem>>, vector<128x128xf32>
    %cst_5 = arith.constant dense<0.000000e+00> : vector<32x128xf32>
    %4 = tpu.matmul %2, %3, %cst_5 {dimension_numbers = #tpu.dot_dimension_numbers<[1], [0], [0], [1], [0, 0, 1, 1], [], []>} : vector<32x128xf32>, vector<128x128xf32>, vector<32x128xf32> -> vector<32x128xf32>
    %c0_6 = arith.constant 0 : index
    %c0_7 = arith.constant 0 : index
    %5 = vector.load %arg4[%c0_6, %c0_7] : memref<32x128xf32, #tpu.memory_space<vmem>>, vector<32x128xf32>
    %6 = arith.addf %4, %5 : vector<32x128xf32>
    %cst_8 = arith.constant 0.000000e+00 : f32
    %7 = vector.broadcast %cst_8 : f32 to vector<32x128xf32>
    %8 = arith.maximumf %6, %7 : vector<32x128xf32>
    %c0_9 = arith.constant 0 : index
    %c0_10 = arith.constant 0 : index
    %9 = vector.load %arg5[%c0_9, %c0_10] : memref<32x128xf32, #tpu.memory_space<vmem>>, vector<32x128xf32>
    tpu.vector_store %arg5[%c0_9, %c0_10], %8 {strides = array<i32>} : memref<32x128xf32, #tpu.memory_space<vmem>>, vector<32x128xf32>,
    return
  }
  func.func @transform_0(%arg0: i32) -> (i32, i32) {
    %c0_i32 = arith.constant 0 : i32
    %c0_i32_0 = arith.constant 0 : i32
    %c0_i32_1 = arith.constant 0 : i32
    return %c0_i32, %c0_i32_0 : i32, i32
  }
  func.func @transform_1(%arg0: i32) -> (i32, i32) {
    %c0_i32 = arith.constant 0 : i32
    %c0_i32_0 = arith.constant 0 : i32
    %c0_i32_1 = arith.constant 0 : i32
    return %c0_i32, %c0_i32_0 : i32, i32
  }
  func.func @transform_2(%arg0: i32) -> (i32, i32) {
    %c0_i32 = arith.constant 0 : i32
    %c0_i32_0 = arith.constant 0 : i32
    %c0_i32_1 = arith.constant 0 : i32
    return %c0_i32, %c0_i32_0 : i32, i32
  }
  func.func @transform_3(%arg0: i32) -> (i32, i32) {
    %c0_i32 = arith.constant 0 : i32
    %c0_i32_0 = arith.constant 0 : i32
    %c0_i32_1 = arith.constant 0 : i32
    return %c0_i32, %c0_i32_0 : i32, i32
  }
  func.func @transform_4(%arg0: i32) -> (i32, i32) {
    %c0_i32 = arith.constant 0 : i32
    %c0_i32_0 = arith.constant 0 : i32
    %c0_i32_1 = arith.constant 0 : i32
    return %c0_i32, %c0_i32_0 : i32, i32
  }
}

</mosaic_0001>

<bundles_post_ra>
// kernel: gcn_forward.1
= control target key start
LH: loop header
LB: loop body
LE: loop exit
PB: predicated region body
PF: predicated region fallthrough
CT: control target
= control target key end

     0   :  { %vm26_vm0 = vcmask 261120   ;;  %s327_s0 = inlined_call_operand.vmem [shape: f32[32,128], index: 0, kind: input, shape index: {}]   ;;  %s328_s1 = inlined_call_operand.vmem [shape: f32[32,32], index: 1, kind: input, shape index: {}]   ;;  %s329_s2 = inlined_call_operand.vmem [shape: f32[128,128], index: 2, kind: input, shape index: {}]   ;;  %s330_s3 = inlined_call_operand.vmem [shape: f32[32,128], index: 3, kind: input, shape index: {}]   ;;  %s331_s4 = inlined_call_operand.hbm [shape: f32[32,128], index: 4, kind: output, shape index: {}]  }
   0x1   :  { %v25_v0 = vld [vmem:[%s327_s0 + $0x18] sm:$0xff]  ;;  %v24_v1 = vld [vmem:[%s327_s0 + $0x10] sm:$0xff]  ;;  %v23_v2 = vld [vmem:[%s327_s0 + $0x8] sm:$0xff] }
   0x2   :  { %51 = vmatpush.msra.mxu0 %v25_v0  ;;  %v83_v3 = vld [vmem:[%s329_s2 + $0x78] sm:$0xff]  ;;  %v82_v4 = vld [vmem:[%s329_s2 + $0x70] sm:$0xff]  ;;  %v22_v5 = vld [vmem:[%s327_s0] sm:$0xff] }
   0x3   :  { %88 = vmatpush.msra.mxu1 %v83_v3  ;;  %v81_v6 = vld [vmem:[%s329_s2 + $0x68] sm:$0xff]  ;;  %147 = vmatpush.msra.mxu2 %v83_v3  ;;  %v18_v7 = vld [vmem:[%s328_s1] sm:$0xff] }
   0x4   :  { %52 = vmatpush.msra.mxu0 %v24_v1  ;;  %148 = vmatpush.msra.mxu3 %v83_v3  ;;  %v80_v8 = vld [vmem:[%s329_s2 + $0x60] sm:$0xff] }
   0x5   :  { %89 = vmatpush.msra.mxu1 %v82_v4  ;;  %149 = vmatpush.msra.mxu2 %v82_v4 }
   0x6   :  { %53 = vmatpush.msra.mxu0 %v23_v2  ;;  %150 = vmatpush.msra.mxu3 %v82_v4 }
   0x7   :  { %90 = vmatpush.msra.mxu1 %v81_v6 }
   0x8   :  { %54 = vmatpush.msra.mxu0 %v22_v5 }
   0x9   :  { %9 = vsyncpa [#allocation3], 0  ;;  %143 = vmatmul.msk.f32.vlgmr.msra.gmra.mxu0 %vm26_vm0, %v18_v7  ;;  %v79_v9 = vld [vmem:[%s329_s2 + $0x58] sm:$0xff]  ;;  %151 = vmatpush.msra.mxu2 %v81_v6  ;;  %v78_v10 = vld [vmem:[%s329_s2 + $0x50] sm:$0xff]  ;;  %s208_s15 = smov [#allocation2]   ;;  %s131_s19 = sshll.u32 %s331_s4, 4  ;;  %s132_s19 = int_to_ptr.hbm [resolvable:$true] %s131_s19 }
   0xa   :  { %91 = vmatpush.msra.mxu1 %v80_v8  ;;  %152 = vmatpush.msra.mxu3 %v81_v6  ;;  %v77_v11 = vld [vmem:[%s329_s2 + $0x48] sm:$0xff]  ;;  %v76_v13 = vld [vmem:[%s329_s2 + $0x40] sm:$0xff]  ;;  %v75_v14 = vld [vmem:[%s329_s2 + $0x38] sm:$0xff]  ;;  %s129_s16 = sshll.u32 %s208_s15, 4  ;;  %s209_s20 = smov 128   ;;  %s130_s16 = int_to_ptr.vmem [resolvable:$true] %s129_s16 }
   0xb   :  { %153 = vmatpush.msra.mxu2 %v80_v8  ;;  %v19_v12 = vld [vmem:[%s328_s1 + $0x8] sm:$0xff]  ;;  %v74_v15 = vld [vmem:[%s329_s2 + $0x30] sm:$0xff]  ;;  %v72_v18 = vld [vmem:[%s329_s2 + $0x20] sm:$0xff]  ;;  %s210_s21 = smov 8  }
   0xc   :  { %92 = vmatpush.msra.mxu1 %v79_v9  ;;  %154 = vmatpush.msra.mxu3 %v80_v8  ;;  %v73_v16 = vld [vmem:[%s329_s2 + $0x28] sm:$0xff]  ;;  %v20_v17 = vld [vmem:[%s328_s1 + $0x10] sm:$0xff]  ;;  %v71_v19 = vld [vmem:[%s329_s2 + $0x18] sm:$0xff] }
   0xd   :  { %155 = vmatpush.msra.mxu2 %v79_v9  ;;  %v70_v20 = vld [vmem:[%s329_s2 + $0x10] sm:$0xff]  ;;  %v69_v21 = vld [vmem:[%s329_s2 + $0x8] sm:$0xff]  ;;  %v21_v22 = vld [vmem:[%s328_s1 + $0x18] sm:$0xff] }
   0xe   :  { %93 = vmatpush.msra.mxu1 %v78_v10  ;;  %156 = vmatpush.msra.mxu3 %v79_v9  ;;  %v68_v23 = vld [vmem:[%s329_s2] sm:$0xff]  ;;  %v85_v32 = vld [vmem:[%s330_s3 + $0x8] sm:$0xff]  ;;  %v86_v36 = vld [vmem:[%s330_s3 + $0x10] sm:$0xff] }
   0xf   :  { %157 = vmatpush.msra.mxu2 %v78_v10  ;;  %v84_v28 = vld [vmem:[%s330_s3] sm:$0xff]  ;;  %v87_v40 = vld [vmem:[%s330_s3 + $0x18] sm:$0xff] }
  0x10   :  { %94 = vmatpush.msra.mxu1 %v77_v11  ;;  %158 = vmatpush.msra.mxu3 %v78_v10 }
  0x11   :  { %144 = vmatmul.msk.f32.gmra.mxu0 %vm26_vm0, %v19_v12  ;;  %159 = vmatpush.msra.mxu2 %v77_v11 }
  0x12   :  { %95 = vmatpush.msra.mxu1 %v76_v13  ;;  %160 = vmatpush.msra.mxu3 %v77_v11 }
  0x13   :  { %161 = vmatpush.msra.mxu2 %v76_v13 }
  0x14   :  { %96 = vmatpush.msra.mxu1 %v75_v14  ;;  %162 = vmatpush.msra.mxu3 %v76_v13 }
  0x15   :  { %163 = vmatpush.msra.mxu2 %v75_v14 }
  0x16   :  { %97 = vmatpush.msra.mxu1 %v74_v15  ;;  %164 = vmatpush.msra.mxu3 %v75_v14 }
  0x17   :  { %165 = vmatpush.msra.mxu2 %v74_v15 }
  0x18   :  { %98 = vmatpush.msra.mxu1 %v73_v16  ;;  %166 = vmatpush.msra.mxu3 %v74_v15 }
  0x19   :  { %145 = vmatmul.msk.f32.gmra.mxu0 %vm26_vm0, %v20_v17  ;;  %167 = vmatpush.msra.mxu2 %v73_v16 }
  0x1a   :  { %99 = vmatpush.msra.mxu1 %v72_v18  ;;  %168 = vmatpush.msra.mxu3 %v73_v16 }
  0x1b   :  { %169 = vmatpush.msra.mxu2 %v72_v18 }
  0x1c   :  { %100 = vmatpush.msra.mxu1 %v71_v19  ;;  %170 = vmatpush.msra.mxu3 %v72_v18 }
  0x1d   :  { %171 = vmatpush.msra.mxu2 %v71_v19 }
  0x1e   :  { %101 = vmatpush.msra.mxu1 %v70_v20  ;;  %172 = vmatpush.msra.mxu3 %v71_v19 }
  0x1f   :  { %173 = vmatpush.msra.mxu2 %v70_v20 }
  0x20   :  { %102 = vmatpush.msra.mxu1 %v69_v21  ;;  %174 = vmatpush.msra.mxu3 %v70_v20 }
  0x21   :  { %146 = vmatmul.msk.f32.gmra.mxu0 %vm26_vm0, %v21_v22  ;;  %175 = vmatpush.msra.mxu2 %v69_v21 }
  0x22   :  { %176 = vmatpush.msra.mxu3 %v69_v21  ;;  %103 = vmatpush.msra.mxu1 %v68_v23 }
  0x23   :  { %177 = vmatpush.msra.mxu2 %v68_v23 }
  0x24   :  { %178 = vmatpush.msra.mxu3 %v68_v23 }
  0x86   :  { %v56_v24 = vpop.f32.mrf.mxu0 }
  0x87   :  { %104 = vmatmul.f32.vlgmr.msra.gmra.mxu1 %v56_v24 }
  0x8e   :  { %v59_v25 = vpop.f32.mrf.mxu0 }
  0x8f   :  { %107 = vmatmul.f32.vlgmr.msra.gmra.mxu2 %v59_v25 }
  0x96   :  { %v62_v26 = vpop.f32.mrf.mxu0 }
  0x97   :  { %110 = vmatmul.f32.vlgmr.msra.gmra.mxu3 %v62_v26 }
  0x9e   :  { %v65_v27 = vpop.f32.mrf.mxu0 }
  0x9f   :  { %113 = vmatmul.f32.gmra.mxu3 %v65_v27 }
 0x104   :  { %v105_v29 = vpop.f32.mrf.mxu1 }
 0x105   :  { %v106_v30 = vadd.f32 %v105_v29, %v84_v28 }
 0x107   :  { %v117_v31 = vmax.f32 %v106_v30, 0.0 }
 0x109   :  { %121 = vst [vmem:[#allocation2] sm:$0xff] %v117_v31 }
 0x112   :  { %v108_v33 = vpop.f32.mrf.mxu2 }
 0x113   :  { %v109_v34 = vadd.f32 %v108_v33, %v85_v32 }
 0x115   :  { %v118_v35 = vmax.f32 %v109_v34, 0.0 }
 0x117   :  { %122 = vst [vmem:[#allocation2 + $0x8] sm:$0xff] %v118_v35 }
 0x11a   :  { %v111_v37 = vpop.f32.mrf.mxu3 }
 0x11b   :  { %v112_v38 = vadd.f32 %v111_v37, %v86_v36 }
 0x11d   :  { %v119_v39 = vmax.f32 %v112_v38, 0.0 }
 0x11f   :  { %123 = vst [vmem:[#allocation2 + $0x10] sm:$0xff] %v119_v39 }
 0x122   :  { %v114_v41 = vpop.f32.mrf.mxu3 }
 0x123   :  { %v115_v42 = vadd.f32 %v114_v41, %v87_v40 }
 0x125   :  { %v120_v43 = vmax.f32 %v115_v42, 0.0 }
 0x127   :  { %124 = vst [vmem:[#allocation2 + $0x18] sm:$0xff] %v120_v43 }
 0x128   :  { %137 = dma.vmem_to_hbm [thread:$0]  %s130_s16, 512, %s132_s19, [#allocation3], %s209_s20, %s209_s20, %s210_s21  }
 0x129   :  { %206 = dma.done.wait [#allocation3], 512  }
 0x12a   :  { %207 = vsyncadd [#allocation3], 4294966784 }
 0x12b   :  { %142 = vsyncpa [#allocation3], 1 }

</bundles_post_ra>
